<compile_context>
chip_gen: v7x
topology: tpu7x:2x2x1
jax: 0.10.0
libtpu: 0.0.40
codegen_flags: <defaults>
</compile_context>

<pallas_src>
import functools

import jax
import jax.numpy as jnp
from jax.experimental import pallas as pl
from jax.experimental.pallas import tpu as pltpu

_LANES = 128
_SUBLANES = 8


def _ce_label_smooth_kernel(logits_ref, targets_ref, out_ref, *, epsilon,
                            num_classes, batch, tile_b):
    # logits_ref : (tile_b, K) native dtype (f32/bf16)
    # targets_ref: (tile_b, 1) int32
    # out_ref    : (1, _LANES) f32   -- lane-dense per-tile partial sum
    x = logits_ref[...].astype(jnp.float32)          # in-register f32 cast
    tb, k = x.shape

    # Numerically stable logsumexp pieces (class dim on the lane axis).
    m = jnp.max(x, axis=1, keepdims=True)                            # (tb, 1)
    # NOTE: exp stays f32 on all generations (v5e EUP has no bf16 path); on
    # v7x a bf16 exp could be revisited if EUP ever becomes the binding slot.
    lse = jnp.log(jnp.sum(jnp.exp(x - m), axis=1, keepdims=True))    # (tb, 1)

    # Fused weighted reduction: weights sum to 1 over classes, so
    #   per_row = -sum_k w_k * logp_k = (m + lse) - sum_k w_k * x_k
    cls_idx = jax.lax.broadcasted_iota(jnp.int32, (tb, k), 1)
    w_other = epsilon / float(num_classes)
    w_target = (1.0 - epsilon) + w_other
    w = jnp.where(cls_idx == targets_ref[...], w_target, w_other)    # (tb, k)
    wx = jnp.sum(w * x, axis=1, keepdims=True)                       # (tb, 1)

    per_row = (m + lse) - wx                                         # (tb, 1)

    if batch % tile_b != 0:                   # static: partial edge block only
        row_idx = (pl.program_id(0) * tile_b
                   + jax.lax.broadcasted_iota(jnp.int32, (tb, 1), 0))
        per_row = jnp.where(row_idx < batch, per_row, 0.0)

    out_ref[...] = jnp.full((1, _LANES), jnp.sum(per_row), dtype=jnp.float32)


def cross_entropy_label_smooth(logits, targets, *, num_classes, epsilon=0.1):
    """logits: (B, num_classes) float (f32/bf16); targets: (B,) int -> scalar f32."""
    B, K = logits.shape
    assert K == num_classes

    # --- Tile sizing (no HBM-side padding) -------------------------------
    # VMEM footprint per row ~= double-buffered native-dtype input
    #                          + ~6 f32 tile temporaries (lane-padded K).
    k_lanes = ((K + _LANES - 1) // _LANES) * _LANES
    itemsize = jnp.dtype(logits.dtype).itemsize
    per_row_bytes = 2 * k_lanes * itemsize + 6 * k_lanes * 4
    budget_bytes = 32 * 1024 * 1024           # sized for v7x's 64 MiB VMEM
    tile_b = (budget_bytes // per_row_bytes) // _SUBLANES * _SUBLANES
    tile_b = max(_SUBLANES, min(2048, tile_b))
    # Keep >= 2 grid steps when the batch allows, so the "parallel" batch axis
    # actually splits across v7x's two TensorCores.
    if B > 2 * _SUBLANES:
        half_b = ((pl.cdiv(B, 2) + _SUBLANES - 1) // _SUBLANES) * _SUBLANES
        tile_b = min(tile_b, half_b)
    # Never larger than the sublane-rounded batch itself.
    tile_b = min(tile_b, ((B + _SUBLANES - 1) // _SUBLANES) * _SUBLANES)
    grid_b = pl.cdiv(B, tile_b)

    targets2d = targets.astype(jnp.int32).reshape(B, 1)

    kernel = functools.partial(
        _ce_label_smooth_kernel,
        epsilon=float(epsilon), num_classes=int(num_classes),
        batch=int(B), tile_b=int(tile_b))

    partials = pl.pallas_call(
        kernel,
        out_shape=jax.ShapeDtypeStruct((grid_b, _LANES), jnp.float32),
        grid=(grid_b,),
        in_specs=[
            # Full-K class block (no wrapper pad); native dtype through DMA.
            pl.BlockSpec((tile_b, K), lambda i: (i, 0)),
            pl.BlockSpec((tile_b, 1), lambda i: (i, 0)),   # labels ride along
        ],
        out_specs=pl.BlockSpec((1, _LANES), lambda i: (i, 0)),
        compiler_params=pltpu.CompilerParams(
            dimension_semantics=("parallel",),
            vmem_limit_bytes=48 * 1024 * 1024),
    )(logits, targets2d)

    # Tiny final reduce in XLA; multiply by the compile-time constant 1/B.
    return jnp.sum(partials[:, 0]) * (1.0 / B)


def _reference(logits, targets, num_classes, epsilon=0.1):
    log_probs = jax.nn.log_softmax(logits.astype(jnp.float32), axis=1)
    onehot = jax.nn.one_hot(targets, num_classes, dtype=jnp.float32)
    smoothed = (1.0 - epsilon) * onehot + epsilon / num_classes
    return jnp.sum(jnp.mean(-smoothed * log_probs, axis=0))


if __name__ == "__main__":
    key = jax.random.PRNGKey(0)
    k1, k2, k3, k4 = jax.random.split(key, 4)

    # Test 1: small aligned shapes (B=8, K=32).
    B, K = 8, 32
    logits = jax.random.normal(k1, (B, K), dtype=jnp.float32)
    targets = jax.random.randint(k2, (B,), 0, K, dtype=jnp.int32)
    loss = jax.block_until_ready(
        cross_entropy_label_smooth(logits, targets, num_classes=K, epsilon=0.1))
    ref = _reference(logits, targets, K, epsilon=0.1)
    assert jnp.allclose(loss, ref, atol=1e-5, rtol=1e-5), (loss, ref)

    # Test 2: unaligned shapes exercising partial edge blocks (B=10, K=200).
    B2, K2 = 10, 200
    logits2 = jax.random.normal(k3, (B2, K2), dtype=jnp.float32)
    targets2 = jax.random.randint(k4, (B2,), 0, K2, dtype=jnp.int32)
    loss2 = jax.block_until_ready(
        cross_entropy_label_smooth(logits2, targets2, num_classes=K2, epsilon=0.1))
    ref2 = _reference(logits2, targets2, K2, epsilon=0.1)
    assert jnp.allclose(loss2, ref2, atol=1e-5, rtol=1e-5), (loss2, ref2)

    # Test 3: bf16 logits stay bf16 through the DMA, cast in-register.
    logits3 = logits.astype(jnp.bfloat16)
    loss3 = jax.block_until_ready(
        cross_entropy_label_smooth(logits3, targets, num_classes=K, epsilon=0.1))
    ref3 = _reference(logits3.astype(jnp.float32), targets, K, epsilon=0.1)
    assert jnp.allclose(loss3, ref3, atol=2e-3, rtol=2e-3), (loss3, ref3)

    print("KERNEL_OK")
</pallas_src>

<mosaic_0001>
module attributes {stable_mosaic.version = 11 : i64} {
  func.func @_ce_label_smooth_kernel(%arg0: i32, %arg1: memref<8x32xf32, #tpu.memory_space<vmem>>, %arg2: memref<8x1xi32, #tpu.memory_space<vmem>>, %arg3: memref<1x128xf32, #tpu.memory_space<vmem>>) attributes {dimension_semantics = [#tpu.dimension_semantics<parallel>], iteration_bounds = array<i64: 1>, scalar_prefetch = 0 : i64, scratch_operands = 0 : i64, tpu.core_type = #tpu.core_type<tc>, window_params = [{transform_indices = @transform_0, window_bounds = array<i64: 8, 32>}, {transform_indices = @transform_1, window_bounds = array<i64: 8, 1>}, {transform_indices = @transform_2, window_bounds = array<i64: 1, 128>}]} {
    %c0 = arith.constant 0 : index
    %c0_0 = arith.constant 0 : index
    %0 = vector.load %arg1[%c0, %c0_0] : memref<8x32xf32, #tpu.memory_space<vmem>>, vector<8x32xf32>
    %cst = arith.constant dense<0xFF800000> : vector<8xf32>
    %1 = vector.multi_reduction <maximumf>, %0, %cst [1] : vector<8x32xf32> to vector<8xf32>
    %2 = vector.shape_cast %1 : vector<8xf32> to vector<8x1xf32>
    %3 = vector.broadcast %2 : vector<8x1xf32> to vector<8x32xf32>
    %4 = arith.subf %0, %3 : vector<8x32xf32>
    %5 = math.exp %4 : vector<8x32xf32>
    %cst_1 = arith.constant dense<0.000000e+00> : vector<8xf32>
    %6 = vector.multi_reduction <add>, %5, %cst_1 [1] : vector<8x32xf32> to vector<8xf32>
    %7 = vector.shape_cast %6 : vector<8xf32> to vector<8x1xf32>
    %8 = math.log %7 : vector<8x1xf32>
    %9 = tpu.iota {dimensions = array<i32: 1>} : vector<8x32xi32>
    %c0_2 = arith.constant 0 : index
    %c0_3 = arith.constant 0 : index
    %10 = vector.load %arg2[%c0_2, %c0_3] : memref<8x1xi32, #tpu.memory_space<vmem>>, vector<8x1xi32>
    %11 = vector.broadcast %10 : vector<8x1xi32> to vector<8x32xi32>
    %12 = arith.cmpi eq, %9, %11 : vector<8x32xi32>
    %cst_4 = arith.constant 0.903124988 : f32
    %cst_5 = arith.constant 3.125000e-03 : f32
    %13 = vector.broadcast %cst_4 : f32 to vector<8x32xf32>
    %14 = vector.broadcast %cst_5 : f32 to vector<8x32xf32>
    %15 = arith.select %12, %13, %14 : vector<8x32xi1>, vector<8x32xf32>
    %16 = arith.mulf %15, %0 : vector<8x32xf32>
    %cst_6 = arith.constant dense<0.000000e+00> : vector<8xf32>
    %17 = vector.multi_reduction <add>, %16, %cst_6 [1] : vector<8x32xf32> to vector<8xf32>
    %18 = vector.shape_cast %17 : vector<8xf32> to vector<8x1xf32>
    %19 = arith.addf %2, %8 : vector<8x1xf32>
    %20 = arith.subf %19, %18 : vector<8x1xf32>
    %21 = vector.shape_cast %20 : vector<8x1xf32> to vector<1x8x1xf32>
    %cst_7 = arith.constant dense<0.000000e+00> : vector<1xf32>
    %22 = vector.multi_reduction <add>, %21, %cst_7 [1, 2] : vector<1x8x1xf32> to vector<1xf32>
    %23 = vector.shape_cast %22 : vector<1xf32> to vector<1x1x1xf32>
    %24 = vector.extract %23[0, 0, 0] : f32 from vector<1x1x1xf32>
    %25 = vector.broadcast %24 : f32 to vector<1x128xf32>
    %c0_8 = arith.constant 0 : index
    %c0_9 = arith.constant 0 : index
    %26 = vector.load %arg3[%c0_8, %c0_9] : memref<1x128xf32, #tpu.memory_space<vmem>>, vector<1x128xf32>
    tpu.vector_store %arg3[%c0_8, %c0_9], %25 {strides = array<i32>} : memref<1x128xf32, #tpu.memory_space<vmem>>, vector<1x128xf32>,
    return
  }
  func.func @transform_0(%arg0: i32) -> (i32, i32) {
    %c0_i32 = arith.constant 0 : i32
    %c0_i32_0 = arith.constant 0 : i32
    return %arg0, %c0_i32 : i32, i32
  }
  func.func @transform_1(%arg0: i32) -> (i32, i32) {
    %c0_i32 = arith.constant 0 : i32
    %c0_i32_0 = arith.constant 0 : i32
    return %arg0, %c0_i32 : i32, i32
  }
  func.func @transform_2(%arg0: i32) -> (i32, i32) {
    %c0_i32 = arith.constant 0 : i32
    %c0_i32_0 = arith.constant 0 : i32
    return %arg0, %c0_i32 : i32, i32
  }
}

</mosaic_0001>

<bundles_post_ra>
// kernel: tpu_custom_call.1
= control target key start
LH: loop header
LB: loop body
LE: loop exit
PB: predicated region body
PF: predicated region fallthrough
CT: control target
= control target key end

     0   :  { %vm13_vm0 = vcmask 261120   ;;  %s139_s0 = inlined_call_operand.vmem [shape: f32[8,32], index: 0, kind: input, shape index: {}]   ;;  %s140_s1 = inlined_call_operand.vmem [shape: s32[8,1], index: 1, kind: input, shape index: {}]   ;;  %s141_s2 = inlined_call_operand.hbm [shape: f32[1,128], index: 2, kind: output, shape index: {}]  }
   0x1   :  { %v12_v0 = vld [vmem:[%s139_s0] sm:$0xff] }
   0x2   :  { %7 = vsyncpa [#allocation3], 0  ;;  %v14_v1 = vsel %vm13_vm0, %v12_v0, -inf  ;;  %v100_v2 = vmov 0   ;;  %v27_v3 = vld [vmem:[%s140_s1] sm:$0xff]  ;;  %v25_v6 = vlaneseq  ;;  %vm39_vm2 = vcmask 7168  }
   0x3   :  { %71 = vset.pattern.permute.xlu0 %v100_v2  ;;  %v101_v10 = vmov 0.003125   ;;  %s102_s0 = smov [#allocation2]  }
   0x4   :  { %15 = vmax.xlane.f32.xlu0 %v14_v1  ;;  %v26_v8 = vand.u32 127, %v25_v6  ;;  %s58_s1 = sshll.u32 %s102_s0, 4  ;;  %s59_s1 = int_to_ptr.vmem [resolvable:$true] %s58_s1 }
   0x5   :  { %s76_s14 = scalar_lea.vmem %s59_s1, 16  ;;  %s80_s15 = scalar_lea.vmem %s59_s1, 32 }
   0x6   :  { %p77_p0 = scmp.ne.s32.totalorder %s59_s1, %s76_s14  ;;  %p81_p1 = scmp.lt.s32.totalorder %s59_s1, %s59_s1 }
   0x7   :  { %p82_p2 = scmp.lt.s32.totalorder %s80_s15, %s76_s14 }
   0x9   :  { %p83_p3 = por %p82_p2, %p81_p1 }
   0xb   :  { %p84_p4 = pnand %p83_p3, %p77_p0 }
  0x1a   :  { %29 = vperm.xlu0 %71, %v27_v3  }
  0x91   :  { %v16_v4 = vpop.xlane.xlu0 %15 }
  0x92   :  { %v17_v5 = vsub.f32 %v12_v0, %v16_v4 }
  0x94   :  { %v18_v7 = vmul.f32 1.442695, %v17_v5 }
  0x96   :  { %72 = vpow2.f32 %v18_v7 }
  0x99   :  { %v30_v9 = vpop.permute.xlu0 %29 }
  0x9a   :  { %vm31_vm1 = vcmp.eq.s32.totalorder %v26_v8, %v30_v9 }
  0x9b   :  { %v32_v11 = vsel %vm31_vm1, 0.903125, %v101_v10 }
  0x9c   :  { %v33_v12 = vmul.f32 %v32_v11, %v12_v0 }
  0x9e   :  { %v34_v15 = vsel %vm13_vm0, %v33_v12, 0.0 }
  0xa0   :  { %v73_v13 = vpop.eup %72 }
  0xa1   :  { %v20_v14 = vsel %vm13_vm0, %v73_v13, 0.0 }
  0xa2   :  { %21 = vadd.xlane.f32.xlu1 %v20_v14 }
  0xa6   :  { %35 = vadd.xlane.f32.xlu1 %v34_v15 }
 0x12f   :  { %v22_v16 = vpop.xlane.xlu1 %21 }
 0x130   :  { %74 = vlog2.f32 %v22_v16 }
 0x133   :  { %v36_v19 = vpop.xlane.xlu1 %35 }
 0x13a   :  { %v75_v17 = vpop.eup %74 }
 0x13b   :  { %v24_v18 = vmul.f32 0.6931472, %v75_v17 }
 0x13d   :  { %v37_v20 = vadd.f32 %v24_v18, %v16_v4 }
 0x13f   :  { %v38_v21 = vsub.f32 %v37_v20, %v36_v19 }
 0x141   :  { %v40_v22 = vsel %vm39_vm2, %v38_v21, 0.0 }
 0x142   :  { %41 = vadd.xlane.f32.xlu1 %v40_v22 }
 0x1cf   :  { %v42_v23 = vpop.xlane.xlu1 %41 }
 0x1d0   :  { %v43_v24 = vrot.slane %v42_v23, 4 }
 0x1d2   :  { %v44_v25 = vadd.f32 %v43_v24, %v42_v23 }
 0x1d4   :  { %v45_v26 = vrot.slane %v44_v25, 2 }
 0x1d6   :  { %v46_v27 = vadd.f32 %v45_v26, %v44_v25 }
 0x1d8   :  { %v47_v28 = vrot.slane %v46_v27, 1 }
 0x1da   :  { %v48_v29 = vadd.f32 %v47_v28, %v46_v27 }
 0x1dc   :  { %66 = vpush %v48_v29 }
 0x20d   :  { %s67_s13 = spop %66 }
 0x20e   :  { %v50_v30 = vstv %s67_s13 }
 0x20f   :  { %51 = vst [vmem:[#allocation2] sm:$0x1] %v50_v30 }
 0x210   :  { %87 = shalt.err (!%p84_p4)
}
 0x211   :  { %s88_s18 = scalar_lea.hbm %s141_s2, 16 }
 0x212   :  { %p89_p5 = scmp.ne.s32.totalorder %s141_s2, %s88_s18  ;;  %p92_p6 = scmp.lt.u32.totalorder %s88_s18, %s141_s2 }
 0x214   :  { %p94_p7 = pnand %p92_p6, %p89_p5 }
 0x216   :  { %97 = shalt.err (!%p94_p7)
}
 0x217   :  { %61 = dma.vmem_to_hbm [thread:$0]  %s59_s1, 16, %s141_s2, [#allocation3]  }
 0x218   :  { %98 = dma.done.wait [#allocation3], 16  }
 0x219   :  { %99 = vsyncadd [#allocation3], 4294967280 }
 0x21a   :  { %65 = vsyncpa [#allocation3], 1 }

</bundles_post_ra>
